<compile_context>
chip_gen: v6e
topology: v6e:2x2x1
jax: 0.10.0
libtpu: 0.0.40
codegen_flags: <defaults>
</compile_context>

<pallas_src>
import jax
import jax.numpy as jnp
from jax.experimental import pallas as pl
from jax.experimental.pallas import tpu as pltpu

LANES = 128  # vreg lane width; last dim of the lane-dense slab.


def energynet_kernel(params_ref, x_ref, o_ref):
    # params_ref: SMEM (4,) = [w1, b1, w2, b2] (scalar-prefetched once).
    # x_ref:      VMEM (block_rows, 128)
    # o_ref:      VMEM (block_rows, 128)
    w1 = params_ref[0]
    b1 = params_ref[1]
    w2 = params_ref[2]
    b2 = params_ref[3]

    x = x_ref[...]
    h = jnp.maximum(x * w1 + b1, 0.0)   # F.relu(self.input(x))
    o_ref[...] = h * w2 + b2            # self.output(x)


def energynet_forward_pallas(x, w1, b1, w2, b2, *, block_rows=512):
    """Lane-dense, grid-tiled Pallas path. x: (B, 1) float32 -> (B, 1) float32."""
    B = x.shape[0]
    flat = x.reshape(-1).astype(jnp.float32)

    # Lane-dense slab: rows of 128 lanes; row count padded to a multiple of the
    # block so the (8,128)-divisible BlockSpec tiling is always satisfiable.
    rows = pl.cdiv(B, LANES)
    block_rows = max(8, min(block_rows, pl.next_power_of_2(max(rows, 1))))
    rows_pad = pl.cdiv(rows, block_rows) * block_rows
    total = rows_pad * LANES
    flat = jnp.pad(flat, (0, total - B))
    slab = flat.reshape(rows_pad, LANES)

    params = jnp.stack([w1, b1, w2, b2]).astype(jnp.float32)

    out_slab = pl.pallas_call(
        energynet_kernel,
        out_shape=jax.ShapeDtypeStruct((rows_pad, LANES), jnp.float32),
        grid_spec=pltpu.PrefetchScalarGridSpec(
            num_scalar_prefetch=1,                       # params -> SMEM, once
            grid=(rows_pad // block_rows,),
            in_specs=[
                pl.BlockSpec((block_rows, LANES), lambda i, p: (i, 0)),
            ],
            out_specs=pl.BlockSpec((block_rows, LANES), lambda i, p: (i, 0)),
        ),
        compiler_params=pltpu.CompilerParams(
            dimension_semantics=("parallel",),           # megacore on v7x
        ),
    )(params, slab)

    return out_slab.reshape(-1)[:B].reshape(B, 1)


def energynet_reference(x, w1, b1, w2, b2):
    h = jnp.maximum(x * w1 + b1, 0.0)
    return h * w2 + b2


def energynet_forward(x, w1, b1, w2, b2, *, min_pallas_batch=4096):
    """Dispatcher: fused jnp for tiny batches (launch overhead dominates),
    Pallas kernel for large batches."""
    if x.shape[0] < min_pallas_batch:
        return energynet_reference(x, w1, b1, w2, b2)
    return energynet_forward_pallas(x, w1, b1, w2, b2)


if __name__ == "__main__":
    key = jax.random.PRNGKey(0)
    kx, kw1, kb1, kw2, kb2 = jax.random.split(key, 5)

    # Linear(1,1): x has shape (batch, 1). Batch chosen small but non-multiple
    # of 128 so the pad / lane-dense reshape path is exercised; block_rows=8
    # forces a multi-step grid even at this small size.
    B = 2000
    x = jax.random.normal(kx, (B, 1), dtype=jnp.float32)

    w1 = jax.random.uniform(kw1, (), minval=-1.0, maxval=1.0, dtype=jnp.float32)
    b1 = jax.random.uniform(kb1, (), minval=-1.0, maxval=1.0, dtype=jnp.float32)
    w2 = jax.random.uniform(kw2, (), minval=-1.0, maxval=1.0, dtype=jnp.float32)
    b2 = jax.random.uniform(kb2, (), minval=-1.0, maxval=1.0, dtype=jnp.float32)

    # Call the Pallas path directly so the kernel itself is run and checked.
    out = energynet_forward_pallas(x, w1, b1, w2, b2, block_rows=8)
    out = jax.block_until_ready(out)

    ref = energynet_reference(x, w1, b1, w2, b2)
    assert out.shape == (B, 1)
    assert jnp.allclose(out, ref, atol=1e-6, rtol=1e-6), "mismatch vs reference"

    print("KERNEL_OK")
</pallas_src>

<mosaic_0001>
module attributes {stable_mosaic.version = 11 : i64} {
  func.func @energynet_kernel(%arg0: i32, %arg1: memref<4xf32, #tpu.memory_space<smem>>, %arg2: memref<8x128xf32, #tpu.memory_space<vmem>>, %arg3: memref<8x128xf32, #tpu.memory_space<vmem>>) attributes {dimension_semantics = [#tpu.dimension_semantics<parallel>], iteration_bounds = array<i64: 2>, scalar_prefetch = 1 : i64, scratch_operands = 0 : i64, tpu.core_type = #tpu.core_type<tc>, window_params = [{transform_indices = @transform_0, window_bounds = array<i64: 8, 128>}, {transform_indices = @transform_1, window_bounds = array<i64: 8, 128>}]} {
    %c0 = arith.constant 0 : index
    %0 = memref.load %arg1[%c0] : memref<4xf32, #tpu.memory_space<smem>>
    %c1 = arith.constant 1 : index
    %1 = memref.load %arg1[%c1] : memref<4xf32, #tpu.memory_space<smem>>
    %c2 = arith.constant 2 : index
    %2 = memref.load %arg1[%c2] : memref<4xf32, #tpu.memory_space<smem>>
    %c3 = arith.constant 3 : index
    %3 = memref.load %arg1[%c3] : memref<4xf32, #tpu.memory_space<smem>>
    %c0_0 = arith.constant 0 : index
    %c0_1 = arith.constant 0 : index
    %4 = vector.load %arg2[%c0_0, %c0_1] : memref<8x128xf32, #tpu.memory_space<vmem>>, vector<8x128xf32>
    %5 = vector.broadcast %0 : f32 to vector<8x128xf32>
    %6 = arith.mulf %4, %5 : vector<8x128xf32>
    %7 = vector.broadcast %1 : f32 to vector<8x128xf32>
    %8 = arith.addf %6, %7 : vector<8x128xf32>
    %cst = arith.constant 0.000000e+00 : f32
    %9 = vector.broadcast %cst : f32 to vector<8x128xf32>
    %10 = arith.maximumf %8, %9 : vector<8x128xf32>
    %11 = vector.broadcast %2 : f32 to vector<8x128xf32>
    %12 = arith.mulf %10, %11 : vector<8x128xf32>
    %13 = vector.broadcast %3 : f32 to vector<8x128xf32>
    %14 = arith.addf %12, %13 : vector<8x128xf32>
    %c0_2 = arith.constant 0 : index
    %c0_3 = arith.constant 0 : index
    %15 = vector.load %arg3[%c0_2, %c0_3] : memref<8x128xf32, #tpu.memory_space<vmem>>, vector<8x128xf32>
    tpu.vector_store %arg3[%c0_2, %c0_3], %14 {strides = array<i32>} : memref<8x128xf32, #tpu.memory_space<vmem>>, vector<8x128xf32>,
    return
  }
  func.func @transform_0(%arg0: i32, %arg1: memref<4xf32, #tpu.memory_space<smem>>) -> (i32, i32) {
    %c0_i32 = arith.constant 0 : i32
    %c0_i32_0 = arith.constant 0 : i32
    return %arg0, %c0_i32 : i32, i32
  }
  func.func @transform_1(%arg0: i32, %arg1: memref<4xf32, #tpu.memory_space<smem>>) -> (i32, i32) {
    %c0_i32 = arith.constant 0 : i32
    %c0_i32_0 = arith.constant 0 : i32
    return %arg0, %c0_i32 : i32, i32
  }
}

</mosaic_0001>

<bundles_post_ra>
// kernel: tpu_custom_call.1
= control target key start
LH: loop header
LB: loop body
LE: loop exit
PB: predicated region body
PF: predicated region fallthrough
CT: control target
= control target key end

     0   :  { %s402_s9 = smov [#allocation3]   ;;  %s564_s0 = inlined_call_operand.hbm [shape: f32[4], index: 0, kind: input, shape index: {}]   ;;  %s565_s1 = inlined_call_operand.hbm [shape: f32[16,128], index: 1, kind: input, shape index: {}]   ;;  %s566_s2 = inlined_call_operand.hbm [shape: f32[16,128], index: 2, kind: output, shape index: {}]  }
   0x1   :  { %8 = dma.hbm_to_smem %s564_s0, 16, %s402_s9, [#allocation2] }
   0x2   :  { %376 = dma.done.wait [#allocation2], 16 }
   0x3   :  { %377 = vsyncadd [#allocation2], 4294967280 }
   0x4   :  { %10 = sfence }
   0x5   :  { %11 = vsyncpa [#allocation5], 0 }
   0x6   :  { %13 = vsyncpa [#allocation5 + $0x1], 0 }
   0x7   :  { %14 = vsyncpa [#allocation6], 0 }
   0x8   :  { %16 = vsyncpa [#allocation6 + $0x1], 0  ;;  %s423_s12 = smov 0   ;;  %s425_s13 = smov 0  }
   0x9   :  { %s427_s14 = smov 0   ;;  %s429_s15 = smov 0  }
   0xa LB: > { %s444_s0 = sadd.s32 4294967295, %s400_s15   ;;  %s236_s16 = sadd.s32 4294967294, %s400_s15   ;;  %s400_s15 = sphi %s429_s15, %s583_s15   ;;  %s396_s14 = sphi %s427_s14, %s582_s14   ;;  %s392_s13 = sphi %s425_s13, %s581_s13   ;;  %s388_s12 = sphi %s423_s12, %s580_s12  }
   0xb   : > { %s448_s17 = sadd.s32 1, %s400_s15   ;;  %s29_s18 = sadd.s32 1, %s396_s14 }
   0xc   : > { %s26_s19 = ssub.s32 %s400_s15, %s448_s17  ;;  %p36_p0 = scmp.ne.s32.totalorder %s396_s14, %s392_s13 }
   0xd   : > { %p27_p1 = scmp.eq.s32.totalorder %s26_s19, 0  ;;  %p37_p2 = scmp.eq.s32.totalorder %s400_s15, 0 }
   0xe   : > { %p42_p3 = scmp.ne.s32.totalorder %s392_s13, %s388_s12  ;;  %p43_p4 = scmp.eq.s32.totalorder %s444_s0, 0 }
   0xf   : > { %s460_s20 = scalar_select %p27_p1, %s396_s14, %s29_s18  }
  0x10   : > { %p462_p5 = por %p37_p2, %p36_p0  ;;  %p466_p6 = por %p43_p4, %p42_p3 }
  0x11   : > { %p66_p7 = scmp.eq.s32.totalorder %s444_s0, 1  ;;  %p72_p8 = scmp.eq.s32.totalorder %s236_s16, 1 }
  0x12   : > { %s570_s22 = scalar_select %p466_p6, 1, 0 }
  0x13   : > { %p263_p10 = scmp.lt.s32.totalorder %s400_s15, 2  ;;  %p473_p11 = por %p66_p7, %p36_p0 }
  0x14   : > { %p477_p12 = por %p72_p8, %p42_p3  ;;  %s92_s25 = sand.u32 1, %s396_s14  }
  0x15   : > { %s571_s23 = scalar_select %p473_p11, 1, 0 }
  0x16   : > { %s572_s24 = scalar_select %p477_p12, 1, 0 }
  0x17   : > { %s240_s26 = sshll.u32 %s400_s15, 7  ;;  %s239_s27 = sshll.u32 %s92_s25, 3 }
  0x18   : > { %s486_s30 = scalar_lea.hbm %s565_s1, %s240_s26  ;;  %s96_s3 = scalar_lea.vmem [#allocation4], %s239_s27 }
  0x19   : > { %s103_s4 = sshll.u32 %s96_s3, 4  ;;  %p490_p13 = pnand %p263_p10, %p462_p5  ;;  %s494_s4 = int_to_ptr.vmem [resolvable:$true] %s103_s4 }
  0x1a   : > { %s93_s6 = scalar_lea.sflag [#allocation5], %s92_s25  ;;  %s306_s7 = scalar_lea.hbm %s486_s30, 128 }
  0x1b   : > { %p307_p2 = scmp.ne.s32.totalorder %s486_s30, %s306_s7  ;;  %p308_p3 = pneg %p490_p13 }
  0x1c   : > { %s311_s10 = scalar_lea.hbm %s565_s1, 256  ;;  %p312_p5 = scmp.lt.s32.totalorder %s486_s30, %s565_s1 }
  0x1d   : > { %p309_p4 = pnand %p308_p3, %p307_p2  ;;  %p313_p8 = scmp.lt.s32.totalorder %s311_s10, %s306_s7 }
  0x1f   : > { %p310_p7 = pneg %p309_p4  ;;  %p314_p10 = por %p313_p8, %p312_p5 }
  0x21   : > { %p315_p9 = pnand %p314_p10, %p310_p7 }
  0x23   : > { %318 = shalt.err (!%p315_p9)
}
  0x24   : > { %s319_s18 = scalar_lea.vmem %s494_s4, 128  ;;  %s403_s19 = smov [#allocation4]  }
  0x25   : > { %p320_p0 = scmp.ne.s32.totalorder %s494_s4, %s319_s18  ;;  %s324_s21 = sshll.u32 %s403_s19, 4  ;;  %s325_s21 = int_to_ptr.vmem [resolvable:$false] %s324_s21 }
  0x26   : > { %s326_s25 = scalar_lea.vmem %s325_s21, 256  ;;  %p327_p4 = scmp.lt.s32.totalorder %s494_s4, %s325_s21 }
  0x27   : > { %p322_p1 = pnand %p320_p0, %p308_p3  ;;  %p328_p12 = scmp.lt.s32.totalorder %s326_s25, %s319_s18 }
  0x29   : > { %p323_p2 = pneg %p322_p1  ;;  %p329_p11 = por %p328_p12, %p327_p4 }
  0x2b   : > { %p330_p6 = pnand %p329_p11, %p323_p2 }
  0x2d   : > { %333 = shalt.err (!%p330_p6)
}
  0x2e   : > { %258 = dma.hbm_to_vmem [thread:$0]  (!%p490_p13), %s486_s30, 128, %s494_s4, %s93_s6  }
  0x2f   : > { %p574_p9 = scmp.lt.s32.totalorder %s400_s15, 3  ;;  %p575_p7 = scmp.ge.s32.totalorder %s400_s15, 1 }
  0x31   : > { %p109_p0 = pnand %p575_p7, %p574_p9 }
  0x32   : > { %s521_s26 = sand.u32 (!%p109_p0), 1, %s392_s13   ;;  %p576_p6 = scmp.ne.s32.totalorder (!%p109_p0), %s570_s22, 0 }
  0x33   : > { %112 = sbr.rel (%p109_p0) target bundleno = 87 (0x57), region = 24  ;;  %s242_s27 = sshll.u32 (!%p109_p0), %s521_s26, 3 }
  0x34   : > { %s115_s28 = scalar_lea.sflag (!%p109_p0), [#allocation5], %s521_s26  ;;  %s118_s29 = scalar_lea.vmem (!%p109_p0), [#allocation4], %s242_s27 }
  0x38   : > { %379 = dma.done.wait (%p576_p6), %s115_s28, 128  }
  0x39   : > { %381 = vsyncadd (%p576_p6), %s115_s28, 4294967168  ;;  %s137_s30 = sld [smem:[#allocation3]]  ;;  %v141_v0 = vld [vmem:[%s118_s29] sm:$0xff]  ;;  %s136_s6 = scalar_lea.vmem [#allocation7], %s242_s27 }
  0x3a   : > { %s244_s3 = sld [smem:[#allocation3 + $0x1]]  ;;  %s166_s7 = sshll.u32 %s136_s6, 4  ;;  %s167_s7 = int_to_ptr.vmem [resolvable:$true] %s166_s7 }
  0x3b   : > { %s245_s4 = sld [smem:[#allocation3 + $0x2]]  ;;  %s248_s8 = sshll.u32 %s444_s0, 7 }
  0x3c   : > { %s246_s5 = sld [smem:[#allocation3 + $0x3]]  ;;  %s164_s10 = scalar_lea.hbm %s566_s2, %s248_s8 }
  0x3d   : > { %s153_s11 = scalar_lea.sflag [#allocation6], %s521_s26  ;;  %s334_s16 = scalar_lea.vmem %s167_s7, 128 }
  0x3e   : > { %p335_p11 = scmp.ne.s32.totalorder %s167_s7, %s334_s16  ;;  %p577_p12 = scmp.ne.s32.totalorder %s571_s23, 0 }
  0x3f   : > { %v142_v1 = vstv %s137_s30  ;;  %s404_s18 = smov [#allocation7]  }
  0x40   : > { %v143_v2 = vmul.f32 %v142_v1, %v141_v0  ;;  %v144_v3 = vstv %s244_s3  ;;  %p336_p13 = pnand %p335_p11, %p577_p12  ;;  %s338_s19 = sshll.u32 %s404_s18, 4  ;;  %s339_s19 = int_to_ptr.vmem [resolvable:$false] %s338_s19 }
  0x41   : > { %v147_v5 = vstv %s245_s4  ;;  %s340_s21 = scalar_lea.vmem %s339_s19, 256  ;;  %p341_p3 = scmp.lt.s32.totalorder %s167_s7, %s339_s19 }
  0x42   : > { %v145_v4 = vadd.f32 %v144_v3, %v143_v2  ;;  %v149_v7 = vstv %s246_s5  ;;  %p337_p1 = pneg %p336_p13  ;;  %p342_p5 = scmp.lt.s32.totalorder %s340_s21, %s334_s16 }
  0x44   : > { %v146_v6 = vmax.f32 %v145_v4, 0.0  ;;  %p343_p8 = por %p342_p5, %p341_p3 }
  0x46   : > { %v148_v8 = vmul.f32 %v147_v5, %v146_v6  ;;  %p344_p10 = pnand %p343_p8, %p337_p1 }
  0x48   : > { %v150_v9 = vadd.f32 %v149_v7, %v148_v8 }
  0x4a   : > { %151 = vst [vmem:[%s136_s6] sm:$0xff] %v150_v9 }
  0x4b   : > { %347 = shalt.err (!%p344_p10)
}
  0x4c   : > { %s348_s0 = scalar_lea.hbm %s164_s10, 128  ;;  %s352_s27 = scalar_lea.hbm %s566_s2, 256 }
  0x4d   : > { %p349_p2 = scmp.ne.s32.totalorder %s164_s10, %s348_s0  ;;  %p353_p7 = scmp.lt.s32.totalorder %s164_s10, %s566_s2 }
  0x4e   : > { %p354_p0 = scmp.lt.s32.totalorder %s352_s27, %s348_s0 }
  0x4f   : > { %p350_p4 = pnand %p349_p2, %p577_p12 }
  0x50   : > { %p355_p6 = por %p354_p0, %p353_p7 }
  0x51   : > { %p351_p9 = pneg %p350_p4 }
  0x53   : > { %p356_p11 = pnand %p355_p6, %p351_p9 }
  0x55   : > { %359 = shalt.err (!%p356_p11)
}
  0x56   : > { %253 = dma.vmem_to_hbm [thread:$0]  (%p577_p12), %s167_s7, 128, %s164_s10, %s153_s11  }
  0x57 PF: > { %s178_s30 = sand.u32 1, %s388_s12   ;;  %p578_p13 = scmp.ne.s32.totalorder %s572_s24, 0 }
  0x58   : > { %p579_p1 = scmp.ge.s32.totalorder %s400_s15, 2  ;;  %s179_s3 = scalar_lea.sflag [#allocation6], %s178_s30 }
  0x5a   : > { %p260_p3 = pnand %p579_p1, %p578_p13 }
  0x5c   : > { %p261_p5 = pneg %p260_p3 }
  0x5e   : > { %383 = dma.done.wait (%p261_p5), %s179_s3, 128  }
  0x5f   : > { %385 = vsyncadd (%p261_p5), %s179_s3, 4294967168  ;;  %p19_p8 = scmp.ge.s32.totalorder %s448_s17, 4   ;;  %s580_s12 = smov %s392_s13 }
  0x60   : > { %s581_s13 = smov %s396_s14  ;;  %s582_s14 = smov %s460_s20 }
  0x61   : > { %s583_s15 = smov %s448_s17  ;;  %21 = sbr.rel (!%p19_p8) target bundleno = 10 (0xa), region = 69 }
  0x66   :  { %184 = vsyncpa [#allocation5], 1 }
  0x67   :  { %186 = vsyncpa [#allocation5 + $0x1], 1 }
  0x68   :  { %187 = vsyncpa [#allocation6], 1 }
  0x69   :  { %189 = vsyncpa [#allocation6 + $0x1], 1 }

</bundles_post_ra>
